<compile_context>
chip_gen: v7x
topology: tpu7x:2x2x1
jax: 0.10.0
libtpu: 0.0.40
codegen_flags: <defaults>
</compile_context>

<pallas_src>
import functools

import jax
import jax.numpy as jnp
from jax import lax
from jax.experimental import pallas as pl
from jax.experimental.pallas import tpu as pltpu


def _round_up(a: int, b: int) -> int:
    return (a + b - 1) // b * b


def _adaptor_kernel(x_ref, wp_ref, wf_ref, params_ref, o_ref, *,
                    m_total, tm, ragged, approx_gelu):
    # x_ref:      (tm, D_in)  tile of tokens (f32)
    # wp_ref:     (D_in, P)   projection weight (resident, bf16 or f32)
    # wf_ref:     (P, P)      fc weight        (resident, bf16 or f32)
    # params_ref: (4, P)      [b_proj; b_fc; gamma; beta] (f32, resident)
    # o_ref:      (tm, P)
    x = x_ref[...].astype(jnp.float32)

    if ragged:
        # Zero out-of-range tail rows so garbage reads never enter erf/rsqrt.
        row = pl.program_id(0) * tm + lax.broadcasted_iota(jnp.int32, (tm, 1), 0)
        x = jnp.where(row < m_total, x, 0.0)

    params = params_ref[...]
    b_proj = params[0:1, :]
    b_fc = params[1:2, :]
    gamma = params[2:3, :]
    beta = params[3:4, :]

    mm_dtype = wp_ref.dtype  # bf16 (default) or f32

    # projected = Linear(input_dim -> projection_dim), f32 accumulation
    projected = jnp.dot(x.astype(mm_dtype), wp_ref[...],
                        preferred_element_type=jnp.float32) + b_proj

    # GELU: exact erf by default (matches PyTorch nn.GELU); tanh approx optional.
    if approx_gelu:
        h = jax.nn.gelu(projected, approximate=True)
    else:
        inv_sqrt2 = jnp.float32(0.7071067811865476)
        h = 0.5 * projected * (1.0 + lax.erf(projected * inv_sqrt2))

    # fc: Linear(projection_dim -> projection_dim)
    h = jnp.dot(h.astype(mm_dtype), wf_ref[...],
                preferred_element_type=jnp.float32) + b_fc

    # dropout(p=0.1) is identity in eval/inference mode; residual add
    y = h + projected

    # LayerNorm over features: one-pass mean / E[y^2], biased var, eps=1e-5
    mean = jnp.mean(y, axis=-1, keepdims=True)
    mean_sq = jnp.mean(y * y, axis=-1, keepdims=True)
    var = jnp.maximum(mean_sq - mean * mean, 0.0)
    y_norm = (y - mean) * lax.rsqrt(var + jnp.float32(1e-5))

    o_ref[...] = (y_norm * gamma + beta).astype(o_ref.dtype)


@functools.partial(jax.jit,
                   static_argnames=("tile_m", "use_bf16_matmul", "approx_gelu"))
def adaptor_forward(x, w_proj, b_proj, w_fc, b_fc, gamma, beta,
                    tile_m=1024, use_bf16_matmul=True, approx_gelu=False):
    """x: (B, S, D_in) float32.  Returns (B, S, P) float32."""
    B, S, D_in = x.shape
    P = w_proj.shape[1]
    M = B * S

    # --- parameter packing ----------------------------------------------------
    w_dtype = jnp.bfloat16 if use_bf16_matmul else jnp.float32
    wp = w_proj.astype(w_dtype)
    wf = w_fc.astype(w_dtype)
    params = jnp.stack([b_proj, b_fc, gamma, beta]).astype(jnp.float32)  # (4, P)
    wbytes = 2 if use_bf16_matmul else 4

    # --- VMEM budget (all static) ----------------------------------------------
    try:
        vmem_cap = int(pltpu.get_tpu_info().vmem_capacity_bytes)
    except Exception:
        vmem_cap = 64 * 1024 * 1024  # v7x has the smallest per-TC VMEM
    budget = int(vmem_cap * 0.45)

    # Resident blocks are double-buffered by default BlockSpec pipelining.
    resident_bytes = 2 * (wbytes * (D_in * P + P * P) + 4 * 8 * P)
    # Per token row: double-buffered x + out f32 tiles, plus ~4 live (tm, P)
    # f32 intermediates (projected, h, y, LN temporaries).
    bytes_per_row = 2 * 4 * (D_in + P) + 4 * 4 * P
    max_rows = max(8, ((budget - resident_bytes) // bytes_per_row) // 8 * 8)

    tm = min(_round_up(tile_m, 8), _round_up(M, 8))
    # For large M, guarantee >= ~4 grid steps so the "parallel" axis can shard
    # across v7x's two TensorCores (no effect for small M or on v5e/v6e).
    tm = min(tm, max(256, _round_up(pl.cdiv(M, 4), 256)))
    tm = min(tm, max_rows)

    grid_m = pl.cdiv(M, tm)
    ragged = (M % tm) != 0

    x2 = x.reshape(M, D_in)

    kernel = functools.partial(_adaptor_kernel, m_total=M, tm=tm,
                               ragged=ragged, approx_gelu=approx_gelu)

    cost = pl.CostEstimate(
        flops=2 * M * D_in * P + 2 * M * P * P + 14 * M * P,
        transcendentals=M * P,  # erf / tanh
        bytes_accessed=4 * M * (D_in + P) + wbytes * (D_in * P + P * P) + 16 * P,
    )

    out = pl.pallas_call(
        kernel,
        out_shape=jax.ShapeDtypeStruct((M, P), x.dtype),
        grid_spec=pl.GridSpec(
            grid=(grid_m,),
            in_specs=[
                pl.BlockSpec((tm, D_in), lambda i: (i, 0)),   # x tile
                pl.BlockSpec((D_in, P), lambda i: (0, 0)),    # w_proj (resident)
                pl.BlockSpec((P, P), lambda i: (0, 0)),       # w_fc (resident)
                pl.BlockSpec((4, P), lambda i: (0, 0)),       # packed biases/LN
            ],
            out_specs=pl.BlockSpec((tm, P), lambda i: (i, 0)),
        ),
        compiler_params=pltpu.CompilerParams(
            dimension_semantics=("parallel",),
            vmem_limit_bytes=int(vmem_cap * 0.6),
        ),
        cost_estimate=cost,
    )(x2, wp, wf, params)

    return out.reshape(B, S, P)


def _reference(x, w_proj, b_proj, w_fc, b_fc, gamma, beta):
    projected = x @ w_proj + b_proj
    h = 0.5 * projected * (1.0 + lax.erf(projected / jnp.sqrt(2.0)))
    h = h @ w_fc + b_fc
    y = h + projected
    mean = jnp.mean(y, axis=-1, keepdims=True)
    var = jnp.mean((y - mean) ** 2, axis=-1, keepdims=True)
    return (y - mean) * lax.rsqrt(var + 1e-5) * gamma + beta


if __name__ == "__main__":
    # Small shapes consistent with the module: batch=2, seq=8, input_dim=32,
    # projection_dim=128 (lane-dense output width).
    B, S, D_in, P = 2, 8, 32, 128

    key = jax.random.PRNGKey(0)
    kx, kwp, kbp, kwf, kbf = jax.random.split(key, 5)

    x = jax.random.normal(kx, (B, S, D_in), dtype=jnp.float32)

    # Deterministic parameter init (fan-in uniform like nn.Linear).
    lim_p = 1.0 / jnp.sqrt(jnp.float32(D_in))
    w_proj = jax.random.uniform(kwp, (D_in, P), jnp.float32, -lim_p, lim_p)
    b_proj = jax.random.uniform(kbp, (P,), jnp.float32, -lim_p, lim_p)

    lim_f = 1.0 / jnp.sqrt(jnp.float32(P))
    w_fc = jax.random.uniform(kwf, (P, P), jnp.float32, -lim_f, lim_f)
    b_fc = jax.random.uniform(kbf, (P,), jnp.float32, -lim_f, lim_f)

    gamma = jnp.ones((P,), jnp.float32)
    beta = jnp.zeros((P,), jnp.float32)

    ref = _reference(x, w_proj, b_proj, w_fc, b_fc, gamma, beta)

    # Fast path: bf16 MXU inputs, f32 accumulation (looser tolerance).
    out_bf16 = adaptor_forward(x, w_proj, b_proj, w_fc, b_fc, gamma, beta)
    out_bf16 = jax.block_until_ready(out_bf16)
    assert out_bf16.shape == (B, S, P)
    assert jnp.allclose(out_bf16, ref, atol=3e-2, rtol=3e-2), "bf16 path mismatch"

    # Strict path: full-f32 matmuls, tight tolerance vs the reference.
    out_f32 = adaptor_forward(x, w_proj, b_proj, w_fc, b_fc, gamma, beta,
                              use_bf16_matmul=False)
    out_f32 = jax.block_until_ready(out_f32)
    assert jnp.allclose(out_f32, ref, atol=2e-5, rtol=2e-5), "f32 path mismatch"

    print("KERNEL_OK")
</pallas_src>

<mosaic_0001>
module attributes {stable_mosaic.version = 11 : i64} {
  func.func @_adaptor_kernel(%arg0: i32, %arg1: memref<16x32xf32, #tpu.memory_space<vmem>>, %arg2: memref<32x128xbf16, #tpu.memory_space<vmem>>, %arg3: memref<128x128xbf16, #tpu.memory_space<vmem>>, %arg4: memref<4x128xf32, #tpu.memory_space<vmem>>, %arg5: memref<16x128xf32, #tpu.memory_space<vmem>>) attributes {dimension_semantics = [#tpu.dimension_semantics<parallel>], iteration_bounds = array<i64: 1>, scalar_prefetch = 0 : i64, scratch_operands = 0 : i64, tpu.core_type = #tpu.core_type<tc>, window_params = [{transform_indices = @transform_0, window_bounds = array<i64: 16, 32>}, {pipeline_mode = #tpu.pipeline_mode<synchronous>, transform_indices = @transform_1, window_bounds = array<i64: 32, 128>}, {pipeline_mode = #tpu.pipeline_mode<synchronous>, transform_indices = @transform_2, window_bounds = array<i64: 128, 128>}, {pipeline_mode = #tpu.pipeline_mode<synchronous>, transform_indices = @transform_3, window_bounds = array<i64: 4, 128>}, {transform_indices = @transform_4, window_bounds = array<i64: 16, 128>}]} {
    %c0 = arith.constant 0 : index
    %c0_0 = arith.constant 0 : index
    %0 = vector.load %arg1[%c0, %c0_0] : memref<16x32xf32, #tpu.memory_space<vmem>>, vector<16x32xf32>
    %c0_1 = arith.constant 0 : index
    %c0_2 = arith.constant 0 : index
    %1 = vector.load %arg4[%c0_1, %c0_2] : memref<4x128xf32, #tpu.memory_space<vmem>>, vector<4x128xf32>
    %2 = vector.extract_strided_slice %1 {offsets = [0, 0], sizes = [1, 128], strides = [1, 1]} : vector<4x128xf32> to vector<1x128xf32>
    %3 = vector.extract_strided_slice %1 {offsets = [1, 0], sizes = [1, 128], strides = [1, 1]} : vector<4x128xf32> to vector<1x128xf32>
    %4 = vector.extract_strided_slice %1 {offsets = [2, 0], sizes = [1, 128], strides = [1, 1]} : vector<4x128xf32> to vector<1x128xf32>
    %5 = vector.extract_strided_slice %1 {offsets = [3, 0], sizes = [1, 128], strides = [1, 1]} : vector<4x128xf32> to vector<1x128xf32>
    %6 = arith.truncf %0 : vector<16x32xf32> to vector<16x32xbf16>
    %c0_3 = arith.constant 0 : index
    %c0_4 = arith.constant 0 : index
    %7 = vector.load %arg2[%c0_3, %c0_4] : memref<32x128xbf16, #tpu.memory_space<vmem>>, vector<32x128xbf16>
    %cst = arith.constant dense<0.000000e+00> : vector<16x128xf32>
    %8 = tpu.matmul %6, %7, %cst {dimension_numbers = #tpu.dot_dimension_numbers<[1], [0], [0], [1], [0, 0, 1, 1], [], []>} : vector<16x32xbf16>, vector<32x128xbf16>, vector<16x128xf32> -> vector<16x128xf32>
    %9 = vector.broadcast %2 : vector<1x128xf32> to vector<16x128xf32>
    %10 = arith.addf %8, %9 : vector<16x128xf32>
    %cst_5 = arith.constant 5.000000e-01 : f32
    %11 = vector.broadcast %cst_5 : f32 to vector<16x128xf32>
    %12 = arith.mulf %11, %10 : vector<16x128xf32>
    %cst_6 = arith.constant 0.707106769 : f32
    %13 = vector.broadcast %cst_6 : f32 to vector<16x128xf32>
    %14 = arith.mulf %10, %13 : vector<16x128xf32>
    %15 = math.erf %14 : vector<16x128xf32>
    %cst_7 = arith.constant 1.000000e+00 : f32
    %16 = vector.broadcast %cst_7 : f32 to vector<16x128xf32>
    %17 = arith.addf %16, %15 : vector<16x128xf32>
    %18 = arith.mulf %12, %17 : vector<16x128xf32>
    %19 = arith.truncf %18 : vector<16x128xf32> to vector<16x128xbf16>
    %c0_8 = arith.constant 0 : index
    %c0_9 = arith.constant 0 : index
    %20 = vector.load %arg3[%c0_8, %c0_9] : memref<128x128xbf16, #tpu.memory_space<vmem>>, vector<128x128xbf16>
    %cst_10 = arith.constant dense<0.000000e+00> : vector<16x128xf32>
    %21 = tpu.matmul %19, %20, %cst_10 {dimension_numbers = #tpu.dot_dimension_numbers<[1], [0], [0], [1], [0, 0, 1, 1], [], []>} : vector<16x128xbf16>, vector<128x128xbf16>, vector<16x128xf32> -> vector<16x128xf32>
    %22 = vector.broadcast %3 : vector<1x128xf32> to vector<16x128xf32>
    %23 = arith.addf %21, %22 : vector<16x128xf32>
    %24 = arith.addf %23, %10 : vector<16x128xf32>
    %cst_11 = arith.constant dense<0.000000e+00> : vector<16xf32>
    %25 = vector.multi_reduction <add>, %24, %cst_11 [1] : vector<16x128xf32> to vector<16xf32>
    %26 = vector.shape_cast %25 : vector<16xf32> to vector<16x1xf32>
    %cst_12 = arith.constant 1.280000e+02 : f32
    %27 = vector.broadcast %cst_12 : f32 to vector<16x1xf32>
    %28 = arith.divf %26, %27 : vector<16x1xf32>
    %29 = arith.mulf %24, %24 : vector<16x128xf32>
    %cst_13 = arith.constant dense<0.000000e+00> : vector<16xf32>
    %30 = vector.multi_reduction <add>, %29, %cst_13 [1] : vector<16x128xf32> to vector<16xf32>
    %31 = vector.shape_cast %30 : vector<16xf32> to vector<16x1xf32>
    %cst_14 = arith.constant 1.280000e+02 : f32
    %32 = vector.broadcast %cst_14 : f32 to vector<16x1xf32>
    %33 = arith.divf %31, %32 : vector<16x1xf32>
    %34 = arith.mulf %28, %28 : vector<16x1xf32>
    %35 = arith.subf %33, %34 : vector<16x1xf32>
    %cst_15 = arith.constant 0.000000e+00 : f32
    %36 = vector.broadcast %cst_15 : f32 to vector<16x1xf32>
    %37 = arith.maximumf %35, %36 : vector<16x1xf32>
    %38 = vector.broadcast %28 : vector<16x1xf32> to vector<16x128xf32>
    %39 = arith.subf %24, %38 : vector<16x128xf32>
    %cst_16 = arith.constant 9.99999974E-6 : f32
    %40 = vector.broadcast %cst_16 : f32 to vector<16x1xf32>
    %41 = arith.addf %37, %40 : vector<16x1xf32>
    %42 = math.rsqrt %41 : vector<16x1xf32>
    %43 = vector.broadcast %42 : vector<16x1xf32> to vector<16x128xf32>
    %44 = arith.mulf %39, %43 : vector<16x128xf32>
    %45 = vector.broadcast %4 : vector<1x128xf32> to vector<16x128xf32>
    %46 = arith.mulf %44, %45 : vector<16x128xf32>
    %47 = vector.broadcast %5 : vector<1x128xf32> to vector<16x128xf32>
    %48 = arith.addf %46, %47 : vector<16x128xf32>
    %c0_17 = arith.constant 0 : index
    %c0_18 = arith.constant 0 : index
    %49 = vector.load %arg5[%c0_17, %c0_18] : memref<16x128xf32, #tpu.memory_space<vmem>>, vector<16x128xf32>
    tpu.vector_store %arg5[%c0_17, %c0_18], %48 {strides = array<i32>} : memref<16x128xf32, #tpu.memory_space<vmem>>, vector<16x128xf32>,
    return
  }
  func.func @transform_0(%arg0: i32) -> (i32, i32) {
    %c0_i32 = arith.constant 0 : i32
    %c0_i32_0 = arith.constant 0 : i32
    return %arg0, %c0_i32 : i32, i32
  }
  func.func @transform_1(%arg0: i32) -> (i32, i32) {
    %c0_i32 = arith.constant 0 : i32
    %c0_i32_0 = arith.constant 0 : i32
    %c0_i32_1 = arith.constant 0 : i32
    return %c0_i32, %c0_i32_0 : i32, i32
  }
  func.func @transform_2(%arg0: i32) -> (i32, i32) {
    %c0_i32 = arith.constant 0 : i32
    %c0_i32_0 = arith.constant 0 : i32
    %c0_i32_1 = arith.constant 0 : i32
    return %c0_i32, %c0_i32_0 : i32, i32
  }
  func.func @transform_3(%arg0: i32) -> (i32, i32) {
    %c0_i32 = arith.constant 0 : i32
    %c0_i32_0 = arith.constant 0 : i32
    %c0_i32_1 = arith.constant 0 : i32
    return %c0_i32, %c0_i32_0 : i32, i32
  }
  func.func @transform_4(%arg0: i32) -> (i32, i32) {
    %c0_i32 = arith.constant 0 : i32
    %c0_i32_0 = arith.constant 0 : i32
    return %arg0, %c0_i32 : i32, i32
  }
}

</mosaic_0001>

<bundles_post_ra>
// kernel: adaptor_forward.1
= control target key start
LH: loop header
LB: loop body
LE: loop exit
PB: predicated region body
PF: predicated region fallthrough
CT: control target
= control target key end

     0   :  { %v367_v1 = vmov 0.0   ;;  %vm368_vm0 = vmmov 0   ;;  %vm43_vm1 = vcmask 261120   ;;  %s454_s0 = inlined_call_operand.vmem [shape: f32[16,32], index: 0, kind: input, shape index: {}]   ;;  %s455_s1 = inlined_call_operand.vmem [shape: bf16[32,128], index: 1, kind: input, shape index: {}]   ;;  %s456_s2 = inlined_call_operand.vmem [shape: bf16[128,128], index: 2, kind: input, shape index: {}]   ;;  %s457_s3 = inlined_call_operand.vmem [shape: f32[4,128], index: 3, kind: input, shape index: {}]   ;;  %s458_s4 = inlined_call_operand.hbm [shape: f32[16,128], index: 4, kind: output, shape index: {}]  }
   0x1   :  { %v325_v0 = vld [vmem:[%s455_s1] sm:$0xff]   ;;  %292 = vmatprep.subr.bf16.mxu0 %v367_v1  ;;  %v326_v2 = vld [vmem:[%s455_s1 + $0x8] sm:$0xff]   ;;  %300 = vmatprep.subr.bf16.mxu1 %v367_v1 }
   0x2   :  { %293 = vmatpush3.bf16.msra.mxu0 %v325_v0  ;;  %296 = vmatprep.mubr.msk.bf16.mxu0 %vm368_vm0, %v367_v1  ;;  %v19_v3 = vld [vmem:[%s454_s0] sm:$0xff]  ;;  %v20_v4 = vld [vmem:[%s454_s0 + $0x8] sm:$0xff] }
   0x3   :  { %294 = vmatprep.subr.bf16.mxu0 %v367_v1  ;;  %v327_v5 = vld [vmem:[%s456_s2] sm:$0xff]   ;;  %316 = vmatprep.mubr.msk.bf16.mxu1 %vm368_vm0, %v367_v1  ;;  %v328_v6 = vld [vmem:[%s456_s2 + $0x8] sm:$0xff]   ;;  %v22_v7 = vpack.c.bf16 %v20_v4, %v19_v3 }
   0x4   :  { %301 = vmatpush3.bf16.msra.mxu1 %v327_v5 }
   0x5   :  { %302 = vmatprep.subr.bf16.mxu1 %v367_v1 }
   0x6   :  { %295 = vmatpush3.bf16.msra.mxu0 %v326_v2 }
   0x8   :  { %303 = vmatpush3.bf16.msra.mxu1 %v328_v6 }
   0x9   :  { %297 = vmatmul.mubr.msk.bf16.vlgmr.msra.gmra.mrb[0].mxu0 %vm43_vm1, %v22_v7 }
   0xa   :  { %9 = vsyncpa [#allocation3], 0  ;;  %304 = vmatprep.subr.bf16.mxu1 %v367_v1  ;;  %v329_v8 = vld [vmem:[%s456_s2 + $0x10] sm:$0xff]   ;;  %v330_v9 = vld [vmem:[%s456_s2 + $0x18] sm:$0xff]   ;;  %v27_v14 = vlaneseq }
   0xb   :  { %v331_v10 = vld [vmem:[%s456_s2 + $0x20] sm:$0xff]   ;;  %v332_v11 = vld [vmem:[%s456_s2 + $0x28] sm:$0xff]   ;;  %v333_v12 = vld [vmem:[%s456_s2 + $0x30] sm:$0xff]  }
   0xc   :  { %305 = vmatpush3.bf16.msra.mxu1 %v329_v8  ;;  %v334_v13 = vld [vmem:[%s456_s2 + $0x38] sm:$0xff]   ;;  %v433_v15 = vshrl.u32 %v27_v14, 7  ;;  %v21_v17 = vld [vmem:[%s457_s3] sm:$0xf]  ;;  %s369_s2 = smov [#allocation2]  }
   0xd   :  { %306 = vmatprep.subr.bf16.mxu1 %v367_v1  ;;  %s258_s3 = sshll.u32 %s369_s2, 4  ;;  %s259_s3 = int_to_ptr.vmem [resolvable:$true] %s258_s3 }
   0xe   :  { %v29_v16 = vsub.s32 0, %v433_v15  ;;  %v117_v36 = vsub.s32 1, %v433_v15  ;;  %v241_v0 = vsub.s32 2, %v433_v15  ;;  %s343_s13 = scalar_lea.vmem %s259_s3, 256  ;;  %p348_p1 = scmp.lt.s32.totalorder %s259_s3, %s259_s3 }
   0xf   :  { %p344_p0 = scmp.ne.s32.totalorder %s259_s3, %s343_s13  ;;  %p349_p2 = scmp.lt.s32.totalorder %s343_s13, %s343_s13 }
  0x10   :  { %307 = vmatpush3.bf16.msra.mxu1 %v330_v9  ;;  %v30_v18 = vrot.slane %v21_v17, %v29_v16  ;;  %v118_v37 = vrot.slane %v21_v17, %v117_v36  ;;  %v242_v2 = vrot.slane %v21_v17, %v241_v0 }
  0x11   :  { %308 = vmatprep.subr.bf16.mxu1 %v367_v1  ;;  %p350_p3 = por %p349_p2, %p348_p1 }
  0x13   :  { %p351_p4 = pnand %p350_p3, %p344_p0 }
  0x14   :  { %309 = vmatpush3.bf16.msra.mxu1 %v331_v10 }
  0x15   :  { %310 = vmatprep.subr.bf16.mxu1 %v367_v1 }
  0x18   :  { %311 = vmatpush3.bf16.msra.mxu1 %v332_v11 }
  0x19   :  { %312 = vmatprep.subr.bf16.mxu1 %v367_v1 }
  0x1c   :  { %313 = vmatpush3.bf16.msra.mxu1 %v333_v12 }
  0x1d   :  { %314 = vmatprep.subr.bf16.mxu1 %v367_v1  ;;  %v247_v1 = vsub.s32 3, %v433_v15 }
  0x1f   :  { %v248_v5 = vrot.slane %v21_v17, %v247_v1 }
  0x20   :  { %315 = vmatpush3.bf16.msra.mxu1 %v334_v13 }
  0xdc   :  { %v81_v19 = vpop.f32.mrb[0].mxu0 }
  0xdd   :  { %v82_v20 = vadd.f32 %v81_v19, %v30_v18  ;;  %v298_v21 = vpop.f32.mrb[1].mxu0 }
  0xde   :  { %v84_v22 = vpop.f32.mrb[2].mxu0 }
  0xdf   :  { %v90_v23 = vmul.f32 0.70710677, %v82_v20  ;;  %v85_v24 = vadd.f32 %v84_v22, %v30_v18  ;;  %v299_v25 = vpop.f32.mrb[3].mxu0  ;;  %v88_v30 = vmul.f32 0.5, %v82_v20 }
  0xe1   :  { %335 = verf.f32 %v90_v23  ;;  %v91_v26 = vmul.f32 0.70710677, %v85_v24  ;;  %v89_v31 = vmul.f32 0.5, %v85_v24 }
  0xe3   :  { %337 = verf.f32 %v91_v26 }
  0xeb   :  { %v336_v27 = vpop.eup %335 }
  0xec   :  { %v94_v28 = vadd.f32 1.0, %v336_v27 }
  0xed   :  { %v338_v29 = vpop.eup %337 }
  0xee   :  { %v95_v32 = vadd.f32 1.0, %v338_v29  ;;  %v96_v33 = vmul.f32 %v94_v28, %v88_v30 }
  0xf0   :  { %v97_v34 = vmul.f32 %v95_v32, %v89_v31 }
  0xf2   :  { %v98_v35 = vpack.c.bf16 %v97_v34, %v96_v33 }
  0xf4   :  { %317 = vmatmul.mubr.bf16.vlgmr.msra.gmra.mrb[0].mxu1 %v98_v35 }
 0x1c7   :  { %v201_v38 = vpop.f32.mrb[0].mxu1 }
 0x1c8   :  { %v202_v39 = vadd.f32 %v201_v38, %v118_v37  ;;  %v318_v40 = vpop.f32.mrb[1].mxu1 }
 0x1c9   :  { %v204_v41 = vpop.f32.mrb[2].mxu1 }
 0x1ca   :  { %v208_v42 = vadd.f32 %v202_v39, %v82_v20  ;;  %v205_v43 = vadd.f32 %v204_v41, %v118_v37  ;;  %v319_v44 = vpop.f32.mrb[3].mxu1 }
 0x1cc   :  { %v209_v45 = vadd.f32 %v205_v43, %v85_v24  ;;  %210 = vadd.xlane.f32.xlu0 %v208_v42  ;;  %v217_v46 = vmul.f32 %v208_v42, %v208_v42 }
 0x1ce   :  { %219 = vadd.xlane.f32.xlu1 %v217_v46  ;;  %v218_v47 = vmul.f32 %v209_v45, %v209_v45 }
 0x1d0   :  { %212 = vadd.xlane.f32.xlu0 %v209_v45 }
 0x1d2   :  { %221 = vadd.xlane.f32.xlu1 %v218_v47 }
 0x259   :  { %v211_v48 = vpop.xlane.xlu0 %210 }
 0x25a   :  { %v215_v49 = vmul.f32 0.0078125, %v211_v48 }
 0x25b   :  { %v220_v50 = vpop.xlane.xlu1 %219 }
 0x25c   :  { %v225_v51 = vmul.f32 %v215_v49, %v215_v49  ;;  %v223_v52 = vmul.f32 0.0078125, %v220_v50  ;;  %v231_v3 = vsub.f32 %v208_v42, %v215_v49 }
 0x25d   :  { %v213_v53 = vpop.xlane.xlu0 %212 }
 0x25e   :  { %v227_v54 = vsub.f32 %v223_v52, %v225_v51  ;;  %v216_v55 = vmul.f32 0.0078125, %v213_v53 }
 0x25f   :  { %v222_v56 = vpop.xlane.xlu1 %221 }
 0x260   :  { %v229_v57 = vmax.f32 %v227_v54, 0.0  ;;  %v226_v58 = vmul.f32 %v216_v55, %v216_v55  ;;  %v224_v59 = vmul.f32 0.0078125, %v222_v56  ;;  %v232_v7 = vsub.f32 %v209_v45, %v216_v55 }
 0x262   :  { %v233_v60 = vadd.f32 1e-05, %v229_v57  ;;  %v228_v61 = vsub.f32 %v224_v59, %v226_v58 }
 0x264   :  { %339 = vrsqrt.f32 %v233_v60  ;;  %v230_v62 = vmax.f32 %v228_v61, 0.0 }
 0x266   :  { %v234_v63 = vadd.f32 1e-05, %v230_v62 }
 0x268   :  { %341 = vrsqrt.f32 %v234_v63 }
 0x26e   :  { %v340_v4 = vpop.eup %339 }
 0x26f   :  { %v237_v6 = vmul.f32 %v340_v4, %v231_v3 }
 0x271   :  { %v243_v8 = vmul.f32 %v242_v2, %v237_v6 }
 0x272   :  { %v342_v9 = vpop.eup %341 }
 0x273   :  { %v238_v10 = vmul.f32 %v342_v9, %v232_v7  ;;  %v249_v11 = vadd.f32 %v248_v5, %v243_v8 }
 0x275   :  { %v244_v12 = vmul.f32 %v242_v2, %v238_v10  ;;  %251 = vst [vmem:[#allocation2] sm:$0xff] %v249_v11 }
 0x277   :  { %v250_v13 = vadd.f32 %v248_v5, %v244_v12 }
 0x279   :  { %252 = vst [vmem:[#allocation2 + $0x8] sm:$0xff] %v250_v13 }
 0x27a   :  { %354 = shalt.err (!%p351_p4)
}
 0x27b   :  { %s355_s16 = scalar_lea.hbm %s458_s4, 256 }
 0x27c   :  { %p356_p5 = scmp.ne.s32.totalorder %s458_s4, %s355_s16  ;;  %p359_p6 = scmp.lt.u32.totalorder %s355_s16, %s458_s4 }
 0x27e   :  { %p361_p7 = pnand %p359_p6, %p356_p5 }
 0x280   :  { %364 = shalt.err (!%p361_p7)
}
 0x281   :  { %s370_s21 = smov 128   ;;  %s371_s22 = smov 8  }
 0x282   :  { %264 = dma.vmem_to_hbm [thread:$0]  %s259_s3, 256, %s458_s4, [#allocation3], %s370_s21, %s370_s21, %s371_s22  }
 0x283   :  { %365 = dma.done.wait [#allocation3], 256  }
 0x284   :  { %366 = vsyncadd [#allocation3], 4294967040 }
 0x285   :  { %268 = vsyncpa [#allocation3], 1 }

</bundles_post_ra>
